<compile_context>
chip_gen: v6e
topology: v6e:2x2x1
jax: 0.10.0
libtpu: 0.0.40
codegen_flags: <defaults>
</compile_context>

<pallas_src>
import jax
import jax.numpy as jnp
from jax.experimental import pallas as pl
from jax.experimental.pallas import tpu as pltpu


def soft_q_kernel(xa_ref, w1_ref, b1_ref, wf_ref, bf_ref, wo_ref, bo_ref, out_ref):
    # in-kernel cast of the activations to the weights' compute dtype (VPU pack)
    xa = xa_ref[...].astype(w1_ref.dtype)
    # input layer: Linear(obs+act -> H) + ReLU (single merged K=20 dot)
    h1 = jnp.dot(xa, w1_ref[...], preferred_element_type=jnp.float32)
    h1 = jnp.maximum(h1 + b1_ref[...], 0.0)
    # feature network (inferred): Linear(H -> H) + ReLU
    h2 = jnp.dot(h1.astype(wf_ref.dtype), wf_ref[...],
                 preferred_element_type=jnp.float32)
    h2 = jnp.maximum(h2 + bf_ref[...], 0.0)
    # output layer: wo_row (1,Hp) contracted with h2 (tb,Hp) on the hidden axis
    # -> lane-dense (1, tb) row written with full-width stores.
    q_row = jax.lax.dot_general(wo_ref[...], h2, (((1,), (1,)), ((), ())),
                                preferred_element_type=jnp.float32)
    out_ref[...] = (q_row + bo_ref[0, 0]).astype(out_ref.dtype)


def _num_tensorcores():
    """One batch tile per TensorCore: v5e/v6e expose 1 TC per chip; v7x (and
    v4/v5p megacore) expose 2, sharded via the 'parallel' grid axis."""
    try:
        kind = jax.devices()[0].device_kind.lower()
    except Exception:
        return 1
    single_core = any(t in kind for t in
                      ("v5e", "v5 lite", "v5lite", "v6e", "v6 lite", "v6lite"))
    return 1 if single_core else 2


def soft_q_forward(x, a, params, *, n_tiles=None):
    """x: [B, obs_dim], a: [B, act_dim] -> q: [B, 1] (float32)."""
    w1, b1, wf, bf, wo, bo = params
    hp = wf.shape[0]
    B = x.shape[0]
    d_in = x.shape[1] + a.shape[1]

    # torch.cat([x, a], 1) folded here (cheap); the kernel sees one operand and
    # one merged weight -> a single small-K MXU pass.
    xa = jnp.concatenate([x, a], axis=1)

    if n_tiles is None:
        n_tiles = _num_tensorcores()
    n_tiles = max(1, int(n_tiles))

    # Batch tile: multiple of 128 so the (1, tb) output row is lane-dense and the
    # grid divides evenly.  Padding rows are numerically discarded below.
    per_core = pl.cdiv(B, n_tiles)
    tb = max(128, ((per_core + 127) // 128) * 128)
    n_tiles = pl.cdiv(B, tb)
    b_pad = n_tiles * tb
    if b_pad != B:
        xa = jnp.pad(xa, ((0, b_pad - B), (0, 0)))

    # v7x (64 MiB/TC) scaling guard: per-tile working set ~= double-buffered xa
    # tile + output row + resident weights + f32 h1/h2 intermediates.  If this
    # ever trips at larger H / tb, shrink tb (never the hidden width) first and
    # set vmem_limit_bytes via pltpu.CompilerParams.
    vmem_est = (2 * tb * 128 * xa.dtype.itemsize            # xa tile (lane-padded), 2 bufs
                + 2 * tb * 4                                # (1, tb) out row, 2 bufs
                + sum(p.size * p.dtype.itemsize for p in (w1, b1, wf, bf, wo))
                + 2 * tb * hp * 4)                          # h1, h2 f32
    assert vmem_est < 48 * 1024 * 1024, "tile working set near v7x VMEM; shrink tb"

    flops = 2 * b_pad * hp * (d_in + hp + 1)
    bytes_accessed = (xa.size * xa.dtype.itemsize
                      + sum(p.size * p.dtype.itemsize for p in params)
                      + b_pad * 4)

    q_row = pl.pallas_call(
        soft_q_kernel,
        out_shape=jax.ShapeDtypeStruct((1, b_pad), jnp.float32),
        grid=(n_tiles,),
        in_specs=[
            pl.BlockSpec((tb, d_in), lambda i: (i, 0)),      # activations tile
            pl.BlockSpec(w1.shape, lambda i: (0, 0)),        # resident weights
            pl.BlockSpec(b1.shape, lambda i: (0, 0)),
            pl.BlockSpec(wf.shape, lambda i: (0, 0)),
            pl.BlockSpec(bf.shape, lambda i: (0, 0)),
            pl.BlockSpec(wo.shape, lambda i: (0, 0)),
            pl.BlockSpec(memory_space=pltpu.MemorySpace.SMEM),  # scalar out-bias
        ],
        out_specs=pl.BlockSpec((1, tb), lambda i: (0, i)),   # lane-dense output row
        compiler_params=pltpu.CompilerParams(
            dimension_semantics=("parallel",)),
        cost_estimate=pl.CostEstimate(flops=flops, transcendentals=0,
                                      bytes_accessed=bytes_accessed),
    )(xa, w1, b1, wf, bf, wo, bo)
    return q_row[0, :B].reshape(B, 1)


def init_params(key, obs_dim, act_dim, hidden):
    """Torch-Linear-like (uniform fan-in) parameters at natural (unpadded) sizes."""
    ks = jax.random.split(key, 6)
    d_in = obs_dim + act_dim

    def lin(kw, kb, fan_in, fan_out):
        bound = 1.0 / jnp.sqrt(jnp.float32(fan_in))
        w = jax.random.uniform(kw, (fan_in, fan_out), jnp.float32, -bound, bound)
        b = jax.random.uniform(kb, (1, fan_out), jnp.float32, -bound, bound)
        return w, b

    w1, b1 = lin(ks[0], ks[1], d_in, hidden)     # input_layer
    wf, bf = lin(ks[2], ks[3], hidden, hidden)   # feature_network (inferred MLP)
    wo, bo = lin(ks[4], ks[5], hidden, 1)        # output_layer
    return (w1, b1, wf, bf, wo, bo)


def prepare_params(raw, compute_dtype=jnp.bfloat16):
    """Keep W1 stacked (concat folded in the wrapper), zero-pad the hidden width
    to a multiple of 128 (lane-dense, numerically exact), transpose the output
    weight into a (1, Hp) row; biases and the output row stay f32."""
    w1, b1, wf, bf, wo, bo = raw
    h = w1.shape[1]
    hp = ((h + 127) // 128) * 128
    ph = hp - h

    w1p = jnp.pad(w1, ((0, 0), (0, ph))).astype(compute_dtype)
    b1p = jnp.pad(b1, ((0, 0), (0, ph))).astype(jnp.float32)
    wfp = jnp.pad(wf, ((0, ph), (0, ph))).astype(compute_dtype)
    bfp = jnp.pad(bf, ((0, 0), (0, ph))).astype(jnp.float32)
    wop = jnp.pad(wo.T, ((0, 0), (0, ph))).astype(jnp.float32)   # (1, Hp)
    bop = bo.reshape(1, 1).astype(jnp.float32)                   # SMEM scalar
    return (w1p, b1p, wfp, bfp, wop, bop)


def reference_forward(x, a, raw):
    w1, b1, wf, bf, wo, bo = raw
    hi = jax.lax.Precision.HIGHEST
    xa = jnp.concatenate([x, a], axis=1)
    h = jnp.maximum(jnp.dot(xa, w1, precision=hi) + b1, 0.0)
    h = jnp.maximum(jnp.dot(h, wf, precision=hi) + bf, 0.0)
    return jnp.dot(h, wo, precision=hi) + bo


if __name__ == "__main__":
    key = jax.random.PRNGKey(0)
    k_x, k_a, k_p = jax.random.split(key, 3)

    B, OBS, ACT, HID = 96, 16, 4, 64   # module default inter_layers=[64]

    x = jax.random.normal(k_x, (B, OBS), jnp.float32)
    a = jax.random.normal(k_a, (B, ACT), jnp.float32)
    raw = init_params(k_p, OBS, ACT, HID)
    q_ref = reference_forward(x, a, raw)

    # Default path: bf16 MXU operands (bf16-native MXU on v5e/v6e/v7x),
    # f32 accumulation and f32 bias/ReLU.
    params_bf16 = prepare_params(raw, compute_dtype=jnp.bfloat16)
    q = jax.block_until_ready(soft_q_forward(x, a, params_bf16))
    assert q.shape == (B, 1)
    assert jnp.allclose(q, q_ref, atol=3e-2, rtol=3e-2)

    # f32 operand path: closer parity with the PyTorch module's numerics
    # (default MXU precision; tolerance covers it at K=20/128).
    params_f32 = prepare_params(raw, compute_dtype=jnp.float32)
    q32 = jax.block_until_ready(soft_q_forward(x, a, params_f32))
    assert q32.shape == (B, 1)
    assert jnp.allclose(q32, q_ref, atol=1e-4, rtol=1e-4)

    print("KERNEL_OK")
</pallas_src>

<mosaic_0001>
module attributes {stable_mosaic.version = 11 : i64} {
  func.func @soft_q_kernel(%arg0: i32, %arg1: memref<128x20xf32, #tpu.memory_space<vmem>>, %arg2: memref<20x128xbf16, #tpu.memory_space<vmem>>, %arg3: memref<1x128xf32, #tpu.memory_space<vmem>>, %arg4: memref<128x128xbf16, #tpu.memory_space<vmem>>, %arg5: memref<1x128xf32, #tpu.memory_space<vmem>>, %arg6: memref<1x128xf32, #tpu.memory_space<vmem>>, %arg7: memref<1x1xf32, #tpu.memory_space<smem>>, %arg8: memref<1x128xf32, #tpu.memory_space<vmem>>) attributes {dimension_semantics = [#tpu.dimension_semantics<parallel>], iteration_bounds = array<i64: 1>, scalar_prefetch = 0 : i64, scratch_operands = 0 : i64, tpu.core_type = #tpu.core_type<tc>, window_params = [{transform_indices = @transform_0, window_bounds = array<i64: 128, 20>}, {pipeline_mode = #tpu.pipeline_mode<synchronous>, transform_indices = @transform_1, window_bounds = array<i64: 20, 128>}, {pipeline_mode = #tpu.pipeline_mode<synchronous>, transform_indices = @transform_2, window_bounds = array<i64: 1, 128>}, {pipeline_mode = #tpu.pipeline_mode<synchronous>, transform_indices = @transform_3, window_bounds = array<i64: 128, 128>}, {pipeline_mode = #tpu.pipeline_mode<synchronous>, transform_indices = @transform_4, window_bounds = array<i64: 1, 128>}, {pipeline_mode = #tpu.pipeline_mode<synchronous>, transform_indices = @transform_5, window_bounds = array<i64: 1, 128>}, {transform_indices = @transform_6, window_bounds = array<i64: 1, 1>}, {transform_indices = @transform_7, window_bounds = array<i64: 1, 128>}]} {
    %c0 = arith.constant 0 : index
    %c0_0 = arith.constant 0 : index
    %0 = vector.load %arg1[%c0, %c0_0] : memref<128x20xf32, #tpu.memory_space<vmem>>, vector<128x20xf32>
    %1 = arith.truncf %0 : vector<128x20xf32> to vector<128x20xbf16>
    %c0_1 = arith.constant 0 : index
    %c0_2 = arith.constant 0 : index
    %2 = vector.load %arg2[%c0_1, %c0_2] : memref<20x128xbf16, #tpu.memory_space<vmem>>, vector<20x128xbf16>
    %cst = arith.constant dense<0.000000e+00> : vector<128x128xf32>
    %3 = tpu.matmul %1, %2, %cst {dimension_numbers = #tpu.dot_dimension_numbers<[1], [0], [0], [1], [0, 0, 1, 1], [], []>} : vector<128x20xbf16>, vector<20x128xbf16>, vector<128x128xf32> -> vector<128x128xf32>
    %c0_3 = arith.constant 0 : index
    %c0_4 = arith.constant 0 : index
    %4 = vector.load %arg3[%c0_3, %c0_4] : memref<1x128xf32, #tpu.memory_space<vmem>>, vector<1x128xf32>
    %5 = vector.broadcast %4 : vector<1x128xf32> to vector<128x128xf32>
    %6 = arith.addf %3, %5 : vector<128x128xf32>
    %cst_5 = arith.constant 0.000000e+00 : f32
    %7 = vector.broadcast %cst_5 : f32 to vector<128x128xf32>
    %8 = arith.maximumf %6, %7 : vector<128x128xf32>
    %9 = arith.truncf %8 : vector<128x128xf32> to vector<128x128xbf16>
    %c0_6 = arith.constant 0 : index
    %c0_7 = arith.constant 0 : index
    %10 = vector.load %arg4[%c0_6, %c0_7] : memref<128x128xbf16, #tpu.memory_space<vmem>>, vector<128x128xbf16>
    %cst_8 = arith.constant dense<0.000000e+00> : vector<128x128xf32>
    %11 = tpu.matmul %9, %10, %cst_8 {dimension_numbers = #tpu.dot_dimension_numbers<[1], [0], [0], [1], [0, 0, 1, 1], [], []>} : vector<128x128xbf16>, vector<128x128xbf16>, vector<128x128xf32> -> vector<128x128xf32>
    %c0_9 = arith.constant 0 : index
    %c0_10 = arith.constant 0 : index
    %12 = vector.load %arg5[%c0_9, %c0_10] : memref<1x128xf32, #tpu.memory_space<vmem>>, vector<1x128xf32>
    %13 = vector.broadcast %12 : vector<1x128xf32> to vector<128x128xf32>
    %14 = arith.addf %11, %13 : vector<128x128xf32>
    %cst_11 = arith.constant 0.000000e+00 : f32
    %15 = vector.broadcast %cst_11 : f32 to vector<128x128xf32>
    %16 = arith.maximumf %14, %15 : vector<128x128xf32>
    %c0_12 = arith.constant 0 : index
    %c0_13 = arith.constant 0 : index
    %17 = vector.load %arg6[%c0_12, %c0_13] : memref<1x128xf32, #tpu.memory_space<vmem>>, vector<1x128xf32>
    %cst_14 = arith.constant dense<0.000000e+00> : vector<1x128xf32>
    %18 = tpu.matmul %17, %16, %cst_14 {dimension_numbers = #tpu.dot_dimension_numbers<[1], [1], [0], [0], [0, 0, 1, 0], [], []>} : vector<1x128xf32>, vector<128x128xf32>, vector<1x128xf32> -> vector<1x128xf32>
    %c0_15 = arith.constant 0 : index
    %c0_16 = arith.constant 0 : index
    %19 = memref.load %arg7[%c0_15, %c0_16] : memref<1x1xf32, #tpu.memory_space<smem>>
    %20 = vector.broadcast %19 : f32 to vector<1x128xf32>
    %21 = arith.addf %18, %20 : vector<1x128xf32>
    %c0_17 = arith.constant 0 : index
    %c0_18 = arith.constant 0 : index
    %22 = vector.load %arg8[%c0_17, %c0_18] : memref<1x128xf32, #tpu.memory_space<vmem>>, vector<1x128xf32>
    tpu.vector_store %arg8[%c0_17, %c0_18], %21 {strides = array<i32>} : memref<1x128xf32, #tpu.memory_space<vmem>>, vector<1x128xf32>,
    return
  }
  func.func @transform_0(%arg0: i32) -> (i32, i32) {
    %c0_i32 = arith.constant 0 : i32
    %c0_i32_0 = arith.constant 0 : i32
    return %arg0, %c0_i32 : i32, i32
  }
  func.func @transform_1(%arg0: i32) -> (i32, i32) {
    %c0_i32 = arith.constant 0 : i32
    %c0_i32_0 = arith.constant 0 : i32
    %c0_i32_1 = arith.constant 0 : i32
    return %c0_i32, %c0_i32_0 : i32, i32
  }
  func.func @transform_2(%arg0: i32) -> (i32, i32) {
    %c0_i32 = arith.constant 0 : i32
    %c0_i32_0 = arith.constant 0 : i32
    %c0_i32_1 = arith.constant 0 : i32
    return %c0_i32, %c0_i32_0 : i32, i32
  }
  func.func @transform_3(%arg0: i32) -> (i32, i32) {
    %c0_i32 = arith.constant 0 : i32
    %c0_i32_0 = arith.constant 0 : i32
    %c0_i32_1 = arith.constant 0 : i32
    return %c0_i32, %c0_i32_0 : i32, i32
  }
  func.func @transform_4(%arg0: i32) -> (i32, i32) {
    %c0_i32 = arith.constant 0 : i32
    %c0_i32_0 = arith.constant 0 : i32
    %c0_i32_1 = arith.constant 0 : i32
    return %c0_i32, %c0_i32_0 : i32, i32
  }
  func.func @transform_5(%arg0: i32) -> (i32, i32) {
    %c0_i32 = arith.constant 0 : i32
    %c0_i32_0 = arith.constant 0 : i32
    %c0_i32_1 = arith.constant 0 : i32
    return %c0_i32, %c0_i32_0 : i32, i32
  }
  func.func @transform_6(%arg0: i32) -> (i32, i32) {
    %c0_i32 = arith.constant 0 : i32
    %c0_i32_0 = arith.constant 0 : i32
    %c0_i32_1 = arith.constant 0 : i32
    return %c0_i32, %c0_i32_0 : i32, i32
  }
  func.func @transform_7(%arg0: i32) -> (i32, i32) {
    %c0_i32 = arith.constant 0 : i32
    %c0_i32_0 = arith.constant 0 : i32
    return %c0_i32, %arg0 : i32, i32
  }
}

</mosaic_0001>

<bundles_post_ra>
// kernel: tpu_custom_call.1
= control target key start
LH: loop header
LB: loop body
LE: loop exit
PB: predicated region body
PF: predicated region fallthrough
CT: control target
= control target key end

     0   :  { %vm97_vm0 = vcmask 1041408   ;;  %vm72_vm1 = vcmask 162816   ;;  %s850_s0 = inlined_call_operand.vmem [shape: f32[128,20], index: 0, kind: input, shape index: {}]   ;;  %s851_s1 = inlined_call_operand.vmem [shape: bf16[20,128], index: 1, kind: input, shape index: {}]   ;;  %s852_s2 = inlined_call_operand.vmem [shape: f32[1,128], index: 2, kind: input, shape index: {}]   ;;  %s853_s3 = inlined_call_operand.vmem [shape: bf16[128,128], index: 3, kind: input, shape index: {}]   ;;  %s854_s4 = inlined_call_operand.vmem [shape: f32[1,128], index: 4, kind: input, shape index: {}]   ;;  %s855_s5 = inlined_call_operand.vmem [shape: f32[1,128], index: 5, kind: input, shape index: {}]   ;;  %s856_s6 = inlined_call_operand.<no memory space> [shape: f32[1,1], index: 6, kind: input, shape index: {}]   ;;  %s857_s7 = inlined_call_operand.hbm [shape: f32[1,128], index: 7, kind: output, shape index: {}]  }
   0x1   :  { %v648_v0 = vld [vmem:[%s851_s1 + $0x8] ss:$0 sps:$4 sm:$0x33]   ;;  %v649_v1 = vld [vmem:[%s851_s1] sm:$0xff]   ;;  %v31_v6 = vld [vmem:[%s850_s0 + $0x10] sm:$0xff] }
   0x2   :  { %644 = vmatprep.subr.msk.bf16.mxu1 %vm97_vm0, %v648_v0  ;;  %v99_v2 = vsel %vm97_vm0, %v648_v0, 0  ;;  %v29_v3 = vld [vmem:[%s850_s0] sm:$0xff]  ;;  %v30_v4 = vld [vmem:[%s850_s0 + $0x8] sm:$0xff]  ;;  %v32_v7 = vld [vmem:[%s850_s0 + $0x18] sm:$0xff] }
   0x3   :  { %558 = vmatpush3.bf16.msra.mxu1 %v99_v2  ;;  %v45_v5 = vpack.c.bf16 %v30_v4, %v29_v3  ;;  %v33_v8 = vld [vmem:[%s850_s0 + $0x20] sm:$0xff]  ;;  %v34_v9 = vld [vmem:[%s850_s0 + $0x28] sm:$0xff]  ;;  %v46_v10 = vpack.c.bf16 %v32_v7, %v31_v6  ;;  %v650_v12 = vld [vmem:[%s853_s3 + $0x38] sm:$0xff]  }
   0x4   :  { %559 = vmatprep.subr.bf16.mxu1 %v649_v1  ;;  %v47_v11 = vpack.c.bf16 %v34_v9, %v33_v8  ;;  %v35_v13 = vld [vmem:[%s850_s0 + $0x30] sm:$0xff]  ;;  %v36_v14 = vld [vmem:[%s850_s0 + $0x38] sm:$0xff]  ;;  %v37_v16 = vld [vmem:[%s850_s0 + $0x40] sm:$0xff] }
   0x5   :  { %561 = vmatprep.mubr.msk.bf16.mxu1 %vm72_vm1, %v45_v5  ;;  %v651_v15 = vld [vmem:[%s853_s3 + $0x30] sm:$0xff]   ;;  %v38_v17 = vld [vmem:[%s850_s0 + $0x48] sm:$0xff]  ;;  %v48_v19 = vpack.c.bf16 %v36_v14, %v35_v13 }
   0x6   :  { %v652_v18 = vld [vmem:[%s853_s3 + $0x28] sm:$0xff]  }
   0x7   :  { %560 = vmatpush3.bf16.msra.mxu1 %v649_v1 }
   0x8   :  { %577 = vmatprep.subr.bf16.mxu1 %v650_v12 }
   0xa   :  { %562 = vmatmul.mubr.msk.bf16.vlgmr.msra.gmra.mxu1 %vm72_vm1, %v46_v10 }
   0xb   :  { %565 = vmatprep.mubr.msk.bf16.mxu1 %vm72_vm1, %v47_v11  ;;  %578 = vmatpush3.bf16.msra.mxu1 %v650_v12 }
   0xc   :  { %579 = vmatprep.subr.bf16.mxu1 %v651_v15 }
   0xd   :  { %13 = vsyncpa [#allocation4], 0  ;;  %v49_v20 = vpack.c.bf16 %v38_v17, %v37_v16  ;;  %v653_v21 = vld [vmem:[%s853_s3 + $0x20] sm:$0xff]   ;;  %v39_v22 = vld [vmem:[%s850_s0 + $0x50] sm:$0xff]  ;;  %vm681_vm2 = vmmov 0   ;;  %s682_s9 = smov [#allocation3]  }
   0xe   :  { %v40_v23 = vld [vmem:[%s850_s0 + $0x58] sm:$0xff]  ;;  %v41_v24 = vld [vmem:[%s850_s0 + $0x60] sm:$0xff]  ;;  %v42_v25 = vld [vmem:[%s850_s0 + $0x68] sm:$0xff]  ;;  %s486_s10 = sshll.u32 %s682_s9, 4  ;;  %s487_s10 = int_to_ptr.vmem [resolvable:$true] %s486_s10 }
   0xf   :  { %580 = vmatpush3.bf16.msra.mxu1 %v651_v15  ;;  %v654_v26 = vld [vmem:[%s853_s3 + $0x18] sm:$0xff]   ;;  %v50_v27 = vpack.c.bf16 %v40_v23, %v39_v22  ;;  %v51_v28 = vpack.c.bf16 %v42_v25, %v41_v24  ;;  %v43_v29 = vld [vmem:[%s850_s0 + $0x70] sm:$0xff]  ;;  %v656_v33 = vld [vmem:[%s853_s3 + $0x8] sm:$0xff]   ;;  %s658_s11 = scalar_lea.vmem %s487_s10, 16  ;;  %s662_s12 = scalar_lea.vmem %s487_s10, 32 }
  0x10   :  { %581 = vmatprep.subr.bf16.mxu1 %v652_v18  ;;  %v44_v30 = vld [vmem:[%s850_s0 + $0x78] sm:$0xff]  ;;  %v655_v32 = vld [vmem:[%s853_s3 + $0x10] sm:$0xff]   ;;  %v657_v34 = vld [vmem:[%s853_s3] sm:$0xff]   ;;  %p659_p0 = scmp.ne.s32.totalorder %s487_s10, %s658_s11  ;;  %p663_p1 = scmp.lt.s32.totalorder %s487_s10, %s487_s10 }
  0x11   :  { %v52_v31 = vpack.c.bf16 %v44_v30, %v43_v29  ;;  %v494_v37 = vld [vmem:[%s852_s2] ss:$0 sm:$0xff]  ;;  %p664_p2 = scmp.lt.s32.totalorder %s662_s12, %s658_s11 }
  0x12   :  { %566 = vmatmul.mubr.msk.bf16.gmra.mxu1 %vm72_vm1, %v48_v19 }
  0x13   :  { %569 = vmatprep.mubr.msk.bf16.mxu1 %vm72_vm1, %v49_v20  ;;  %582 = vmatpush3.bf16.msra.mxu1 %v652_v18  ;;  %p665_p3 = por %p664_p2, %p663_p1 }
  0x14   :  { %583 = vmatprep.subr.bf16.mxu1 %v653_v21 }
  0x15   :  { %p666_p4 = pnand %p665_p3, %p659_p0 }
  0x17   :  { %584 = vmatpush3.bf16.msra.mxu1 %v653_v21 }
  0x18   :  { %585 = vmatprep.subr.bf16.mxu1 %v654_v26 }
  0x1a   :  { %570 = vmatmul.mubr.msk.bf16.gmra.mxu1 %vm72_vm1, %v50_v27 }
  0x1b   :  { %573 = vmatprep.mubr.msk.bf16.mxu1 %vm72_vm1, %v51_v28  ;;  %586 = vmatpush3.bf16.msra.mxu1 %v654_v26  ;;  %v680_v28 = vmov 0.0  }
  0x1c   :  { %587 = vmatprep.subr.bf16.mxu1 %v655_v32  ;;  %609 = vmatprep.subr.mxu0 %v680_v28 }
  0x1d   :  { %641 = vmatprep.mubr.msk.f32.mxu0 %vm681_vm2, %v680_v28 }
  0x1f   :  { %588 = vmatpush3.bf16.msra.mxu1 %v655_v32 }
  0x20   :  { %589 = vmatprep.subr.bf16.mxu1 %v656_v33 }
  0x22   :  { %574 = vmatmul.mubr.msk.bf16.gmra.mxu1 %vm72_vm1, %v52_v31 }
  0x23   :  { %590 = vmatpush3.bf16.msra.mxu1 %v656_v33 }
  0x24   :  { %591 = vmatprep.subr.bf16.mxu1 %v657_v34 }
  0x27   :  { %592 = vmatpush3.bf16.msra.mxu1 %v657_v34 }
  0xca   :  { %v563_v35 = vpop.f32.mrf.mxu1 }
  0xcb   :  { %v144_v41 = vadd.f32 %v563_v35, %v494_v37 }
  0xcc   :  { %v135_v36 = vpop.f32.mrf.mxu1 }
  0xcd   :  { %v136_v39 = vadd.f32 %v494_v37, %v135_v36  ;;  %v200_v48 = vmax.f32 %v144_v41, 0.0 }
  0xce   :  { %v564_v38 = vpop.f32.mrf.mxu1 }
  0xcf   :  { %v147_v40 = vadd.f32 %v564_v38, %v494_v37  ;;  %v198_v46 = vmax.f32 %v136_v39, 0.0 }
  0xd0   :  { %v138_v42 = vpop.f32.mrf.mxu1 }
  0xd1   :  { %v139_v43 = vadd.f32 %v494_v37, %v138_v42  ;;  %v201_v44 = vmax.f32 %v147_v40, 0.0 }
  0xd2   :  { %v567_v45 = vpop.f32.mrf.mxu1 }
  0xd3   :  { %v199_v47 = vmax.f32 %v139_v43, 0.0  ;;  %v215_v51 = vpack.c.bf16 %v201_v44, %v200_v48  ;;  %v160_v55 = vadd.f32 %v567_v45, %v494_v37  ;;  %v505_v43 = vld [vmem:[%s854_s4] ss:$0 sm:$0xff] }
  0xd4   :  { %v151_v49 = vpop.f32.mrf.mxu1 }
  0xd5   :  { %v214_v50 = vpack.c.bf16 %v199_v47, %v198_v46  ;;  %v152_v53 = vadd.f32 %v494_v37, %v151_v49  ;;  %v204_v62 = vmax.f32 %v160_v55, 0.0 }
  0xd6   :  { %v568_v52 = vpop.f32.mrf.mxu1 }
  0xd7   :  { %v163_v54 = vadd.f32 %v568_v52, %v494_v37  ;;  %593 = vmatprep.mubr.bf16.mxu1 %v214_v50  ;;  %v202_v60 = vmax.f32 %v152_v53, 0.0 }
  0xd8   :  { %v154_v56 = vpop.f32.mrf.mxu1  ;;  %594 = vmatmul.mubr.bf16.vlgmr.msra.gmra.mxu1 %v215_v51 }
  0xd9   :  { %v155_v57 = vadd.f32 %v494_v37, %v154_v56  ;;  %v205_v58 = vmax.f32 %v163_v54, 0.0 }
  0xda   :  { %v571_v59 = vpop.f32.mrf.mxu1 }
  0xdb   :  { %v203_v61 = vmax.f32 %v155_v57, 0.0  ;;  %v217_v1 = vpack.c.bf16 %v205_v58, %v204_v62  ;;  %v176_v5 = vadd.f32 %v571_v59, %v494_v37 }
  0xdc   :  { %v167_v63 = vpop.f32.mrf.mxu1 }
  0xdd   :  { %v216_v0 = vpack.c.bf16 %v203_v61, %v202_v60  ;;  %v168_v3 = vadd.f32 %v494_v37, %v167_v63  ;;  %v208_v12 = vmax.f32 %v176_v5, 0.0 }
  0xde   :  { %v572_v2 = vpop.f32.mrf.mxu1 }
  0xdf   :  { %v179_v4 = vadd.f32 %v572_v2, %v494_v37  ;;  %597 = vmatprep.mubr.bf16.mxu1 %v216_v0  ;;  %v206_v10 = vmax.f32 %v168_v3, 0.0 }
  0xe0   :  { %v170_v6 = vpop.f32.mrf.mxu1  ;;  %598 = vmatmul.mubr.bf16.gmra.mxu1 %v217_v1 }
  0xe1   :  { %v171_v7 = vadd.f32 %v494_v37, %v170_v6  ;;  %v209_v8 = vmax.f32 %v179_v4, 0.0 }
  0xe2   :  { %v575_v9 = vpop.f32.mrf.mxu1 }
  0xe3   :  { %v207_v11 = vmax.f32 %v171_v7, 0.0  ;;  %v219_v15 = vpack.c.bf16 %v209_v8, %v208_v12  ;;  %v192_v19 = vadd.f32 %v575_v9, %v494_v37 }
  0xe4   :  { %v183_v13 = vpop.f32.mrf.mxu1 }
  0xe5   :  { %v218_v14 = vpack.c.bf16 %v207_v11, %v206_v10  ;;  %v184_v17 = vadd.f32 %v494_v37, %v183_v13  ;;  %v212_v25 = vmax.f32 %v192_v19, 0.0 }
  0xe6   :  { %v576_v16 = vpop.f32.mrf.mxu1 }
  0xe7   :  { %v195_v18 = vadd.f32 %v576_v16, %v494_v37  ;;  %601 = vmatprep.mubr.bf16.mxu1 %v218_v14  ;;  %v210_v23 = vmax.f32 %v184_v17, 0.0  ;;  %v406_v14 = vld [vmem:[%s855_s5] sm:$0x1] }
  0xe8   :  { %v186_v20 = vpop.f32.mrf.mxu1  ;;  %602 = vmatmul.mubr.bf16.gmra.mxu1 %v219_v15  ;;  %v408_v15 = vstv %s856_s6 }
  0xe9   :  { %v187_v21 = vadd.f32 %v494_v37, %v186_v20  ;;  %v213_v22 = vmax.f32 %v195_v18, 0.0 }
  0xeb   :  { %v211_v24 = vmax.f32 %v187_v21, 0.0  ;;  %v221_v27 = vpack.c.bf16 %v213_v22, %v212_v25 }
  0xed   :  { %v220_v26 = vpack.c.bf16 %v211_v24, %v210_v23 }
  0xef   :  { %605 = vmatprep.mubr.bf16.mxu1 %v220_v26 }
  0xf0   :  { %606 = vmatmul.mubr.bf16.gmra.mxu1 %v221_v27 }
 0x198   :  { %v814_v29 = vpop.f32.mrf.mxu1 }
 0x199   :  { %v336_v7 = vadd.f32 %v814_v29, %v505_v43 }
 0x19a   :  { %v816_v30 = vpop.f32.mrf.mxu1 }
 0x19b   :  { %v392_v9 = vmax.f32 %v336_v7, 0.0  ;;  %v328_v11 = vadd.f32 %v505_v43, %v816_v30 }
 0x19c   :  { %v596_v31 = vpop.f32.mrf.mxu1 }
 0x19d   :  { %v339_v5 = vadd.f32 %v596_v31, %v505_v43  ;;  %v390_v13 = vmax.f32 %v328_v11, 0.0 }
 0x19e   :  { %v818_v32 = vpop.f32.mrf.mxu1 }
 0x19f   :  { %v393_v8 = vmax.f32 %v339_v5, 0.0  ;;  %v331_v10 = vadd.f32 %v505_v43, %v818_v32 }
 0x1a0   :  { %v599_v33 = vpop.f32.mrf.mxu1 }
 0x1a1   :  { %v352_v63 = vadd.f32 %v599_v33, %v505_v43  ;;  %v391_v12 = vmax.f32 %v331_v10, 0.0 }
 0x1a2   :  { %v343_v34 = vpop.f32.mrf.mxu1 }
 0x1a3   :  { %v396_v1 = vmax.f32 %v352_v63, 0.0  ;;  %v344_v3 = vadd.f32 %v505_v43, %v343_v34 }
 0x1a4   :  { %v600_v35 = vpop.f32.mrf.mxu1 }
 0x1a5   :  { %v355_v61 = vadd.f32 %v600_v35, %v505_v43  ;;  %v394_v6 = vmax.f32 %v344_v3, 0.0 }
 0x1a6   :  { %v346_v36 = vpop.f32.mrf.mxu1 }
 0x1a7   :  { %v397_v0 = vmax.f32 %v355_v61, 0.0  ;;  %v347_v2 = vadd.f32 %v505_v43, %v346_v36 }
 0x1a8   :  { %v603_v37 = vpop.f32.mrf.mxu1 }
 0x1a9   :  { %v368_v55 = vadd.f32 %v603_v37, %v505_v43  ;;  %v395_v4 = vmax.f32 %v347_v2, 0.0 }
 0x1aa   :  { %v359_v38 = vpop.f32.mrf.mxu1 }
 0x1ab   :  { %v400_v57 = vmax.f32 %v368_v55, 0.0  ;;  %v360_v59 = vadd.f32 %v505_v43, %v359_v38 }
 0x1ac   :  { %v604_v39 = vpop.f32.mrf.mxu1 }
 0x1ad   :  { %v371_v53 = vadd.f32 %v604_v39, %v505_v43  ;;  %v398_v62 = vmax.f32 %v360_v59, 0.0 }
 0x1ae   :  { %v362_v40 = vpop.f32.mrf.mxu1 }
 0x1af   :  { %v401_v56 = vmax.f32 %v371_v53, 0.0  ;;  %v363_v58 = vadd.f32 %v505_v43, %v362_v40 }
 0x1b0   :  { %v607_v41 = vpop.f32.mrf.mxu1 }
 0x1b1   :  { %v384_v46 = vadd.f32 %v607_v41, %v505_v43  ;;  %v399_v60 = vmax.f32 %v363_v58, 0.0 }
 0x1b2   :  { %v375_v42 = vpop.f32.mrf.mxu1 }
 0x1b3   :  { %v404_v49 = vmax.f32 %v384_v46, 0.0  ;;  %v376_v51 = vadd.f32 %v505_v43, %v375_v42 }
 0x1b4   :  { %v608_v44 = vpop.f32.mrf.mxu1 }
 0x1b5   :  { %v387_v45 = vadd.f32 %v608_v44, %v505_v43  ;;  %v402_v54 = vmax.f32 %v376_v51, 0.0 }
 0x1b6   :  { %v378_v48 = vpop.f32.mrf.mxu1 }
 0x1b7   :  { %v405_v47 = vmax.f32 %v387_v45, 0.0  ;;  %v379_v50 = vadd.f32 %v505_v43, %v378_v48 }
 0x1b9   :  { %610 = vmatpush3.xpose.msra.mxu0 %v405_v47  ;;  %v403_v52 = vmax.f32 %v379_v50, 0.0 }
 0x1ba   :  { %611 = vmatprep.subr.mxu0 %v680_v28 }
 0x1bd   :  { %612 = vmatpush3.xpose.msra.mxu0 %v404_v49 }
 0x1be   :  { %613 = vmatprep.subr.mxu0 %v680_v28 }
 0x1c1   :  { %614 = vmatpush3.xpose.msra.mxu0 %v403_v52 }
 0x1c2   :  { %615 = vmatprep.subr.mxu0 %v680_v28 }
 0x1c5   :  { %616 = vmatpush3.xpose.msra.mxu0 %v402_v54 }
 0x1c6   :  { %617 = vmatprep.subr.mxu0 %v680_v28 }
 0x1c9   :  { %618 = vmatpush3.xpose.msra.mxu0 %v401_v56 }
 0x1ca   :  { %619 = vmatprep.subr.mxu0 %v680_v28 }
 0x1cd   :  { %620 = vmatpush3.xpose.msra.mxu0 %v400_v57 }
 0x1ce   :  { %621 = vmatprep.subr.mxu0 %v680_v28 }
 0x1d1   :  { %622 = vmatpush3.xpose.msra.mxu0 %v399_v60 }
 0x1d2   :  { %623 = vmatprep.subr.mxu0 %v680_v28 }
 0x1d5   :  { %624 = vmatpush3.xpose.msra.mxu0 %v398_v62 }
 0x1d6   :  { %625 = vmatprep.subr.mxu0 %v680_v28 }
 0x1d9   :  { %626 = vmatpush3.xpose.msra.mxu0 %v397_v0 }
 0x1da   :  { %627 = vmatprep.subr.mxu0 %v680_v28 }
 0x1dd   :  { %628 = vmatpush3.xpose.msra.mxu0 %v396_v1 }
 0x1de   :  { %629 = vmatprep.subr.mxu0 %v680_v28 }
 0x1e1   :  { %630 = vmatpush3.xpose.msra.mxu0 %v395_v4 }
 0x1e2   :  { %631 = vmatprep.subr.mxu0 %v680_v28 }
 0x1e5   :  { %632 = vmatpush3.xpose.msra.mxu0 %v394_v6 }
 0x1e6   :  { %633 = vmatprep.subr.mxu0 %v680_v28 }
 0x1e9   :  { %634 = vmatpush3.xpose.msra.mxu0 %v393_v8 }
 0x1ea   :  { %635 = vmatprep.subr.mxu0 %v680_v28 }
 0x1ed   :  { %636 = vmatpush3.xpose.msra.mxu0 %v392_v9 }
 0x1ee   :  { %637 = vmatprep.subr.mxu0 %v680_v28 }
 0x1f1   :  { %638 = vmatpush3.xpose.msra.mxu0 %v391_v12 }
 0x1f2   :  { %639 = vmatprep.subr.mxu0 %v680_v28 }
 0x1f5   :  { %640 = vmatpush3.xpose.msra.mxu0 %v390_v13 }
 0x1f8   :  { %642 = vmatmul.mubr.f32.vlgmr.msra.gmra.mxu0 %v406_v14 }
 0x2b8   :  { %v475_v16 = vpop.f32.mrf.mxu0 }
 0x2b9   :  { %v476_v17 = vadd.f32 %v475_v16, %v408_v15 }
 0x2ba   :  { %v643_v18 = vpop.f32.mrf.mxu0 }
 0x2bb   :  { %479 = vst [vmem:[#allocation3] sm:$0x1] %v476_v17 }
 0x2bc   :  { %669 = shalt.err (!%p666_p4)
}
 0x2bd   :  { %489 = dma.vmem_to_hbm [thread:$0]  %s487_s10, 16, %s857_s7, [#allocation4]  }
 0x2be   :  { %678 = dma.done.wait [#allocation4], 16  }
 0x2bf   :  { %679 = vsyncadd [#allocation4], 4294967280 }
 0x2c0   :  { %493 = vsyncpa [#allocation4], 1 }

</bundles_post_ra>
